<compile_context>
chip_gen: v7x
topology: tpu7x:2x2x1
jax: 0.10.0
libtpu: 0.0.40
codegen_flags: <defaults>
</compile_context>

<pallas_src>
import math

import jax
import jax.numpy as jnp
from jax.experimental import pallas as pl
from jax.experimental.pallas import tpu as pltpu


# ----------------------------------------------------------------------------
# Kernel 1: projection head (grid over batch, "parallel")
#   cad_latents   = l2norm(tanh((cad_emb @ W1 + b1) @ W2 + b2))
#   image_latents = l2norm(tanh(img_emb @ Wv + bv))
#   sims          = sum(cad_latents * image_latents, -1) * exp(temperature)
# ----------------------------------------------------------------------------
def clip_proj_kernel(cad_ref, img_ref, w1_ref, b1_ref, w2_ref, b2_ref,
                     wv_ref, bv_ref, temp_ref,
                     cad_lat_ref, img_lat_ref, sims_ref):
    eps = 1e-12  # F.normalize eps

    # ---- to_cad_latent: Linear -> Linear -> Tanh (MXU, f32 accumulate)
    cad_h = jnp.dot(cad_ref[...], w1_ref[...],
                    preferred_element_type=jnp.float32) + b1_ref[...]
    cad_h = jnp.dot(cad_h.astype(w2_ref.dtype), w2_ref[...],
                    preferred_element_type=jnp.float32) + b2_ref[...]
    cad_lat = jnp.tanh(cad_h)

    # ---- to_visual_latent: Linear -> Tanh
    img_lat = jnp.tanh(jnp.dot(img_ref[...], wv_ref[...],
                               preferred_element_type=jnp.float32) + bv_ref[...])

    # ---- l2norm: x / max(||x||, eps) == x * rsqrt(max(sumsq, eps^2))  (EUP)
    cad_lat = cad_lat * jax.lax.rsqrt(
        jnp.maximum(jnp.sum(cad_lat * cad_lat, axis=-1, keepdims=True), eps * eps))
    img_lat = img_lat * jax.lax.rsqrt(
        jnp.maximum(jnp.sum(img_lat * img_lat, axis=-1, keepdims=True), eps * eps))

    cad_lat_ref[...] = cad_lat
    img_lat_ref[...] = img_lat

    # ---- temperature: scalar read from SMEM, exp once on the scalar path
    temp = jnp.exp(temp_ref[0, 0])

    # ---- per-sample sims, emitted lane-dense as (1, TB).
    # Row-sum via a tiny MXU matvec keeps the output lane-major without a
    # sublane->lane relayout.
    prod = cad_lat * img_lat
    ones_row = jnp.ones((1, prod.shape[1]), jnp.float32)
    sims_ref[...] = jax.lax.dot_general(
        ones_row, prod,
        dimension_numbers=(((1,), (1,)), ((), ())),
        preferred_element_type=jnp.float32) * temp


# ----------------------------------------------------------------------------
# Kernel 2: symmetric contrastive loss (return_loss=True path, m = n = 1)
#   sim  = (cad_lat @ img_lat.T) * temp
#   loss = mean_i [ 0.5*(logsumexp_j sim[i,j] + logsumexp_j sim[j,i]) - sim[i,i] ]
# ----------------------------------------------------------------------------
def clip_loss_kernel(cad_lat_ref, img_lat_ref, sims_ref, temp_ref, loss_ref):
    temp = jnp.exp(temp_ref[0, 0])

    # Contract dim 1 of both operands: no explicit transpose of img_lat.
    sim = jax.lax.dot_general(
        cad_lat_ref[...], img_lat_ref[...],
        dimension_numbers=(((1,), (1,)), ((), ())),
        preferred_element_type=jnp.float32) * temp          # (B, B)
    b = sim.shape[0]

    # Single exp of the BxB tile, stabilized by the global max.
    m = jnp.max(jnp.max(sim, axis=1, keepdims=True), axis=0, keepdims=True)  # (1,1)
    e = jnp.exp(sim - m)                                    # (B, B)
    row_den = jnp.sum(e, axis=1, keepdims=True)             # (B, 1) cad->image denom
    col_den = jnp.sum(e, axis=0, keepdims=True)             # (1, B) image->cad denom

    s_row = jnp.sum(jnp.log(row_den), axis=0, keepdims=True)   # (1,1)
    s_col = jnp.sum(jnp.log(col_den), axis=1, keepdims=True)   # (1,1)
    s_diag = jnp.sum(sims_ref[...], axis=1, keepdims=True)     # (1,1) = sum diag(sim)

    loss_ref[...] = 0.5 * (s_row + s_col) / b + m - s_diag / b


# ----------------------------------------------------------------------------
# Wrappers
# ----------------------------------------------------------------------------
def _nbytes(shape, dtype):
    return math.prod(shape) * jnp.dtype(dtype).itemsize


def _vmem_limit(byte_counts):
    est = sum(byte_counts)
    return int(min(max(4 * est + (2 << 20), 16 << 20), 48 << 20))


def clip_project(cad_embeds, image_embeds, params, *,
                 matmul_dtype=jnp.float32, tb=None):
    """Returns (cad_latents, image_latents, sims) via the projection kernel."""
    B, Dc = cad_embeds.shape
    Di = image_embeds.shape[1]
    L = params["w2"].shape[1]

    if tb is None:
        tb = B if B <= 128 else 128
    assert B % tb == 0, "batch must be divisible by the batch tile"
    grid = (B // tb,)

    cad_e = cad_embeds.astype(matmul_dtype)
    img_e = image_embeds.astype(matmul_dtype)
    w1 = params["w1"].astype(matmul_dtype)
    w2 = params["w2"].astype(matmul_dtype)
    wv = params["wv"].astype(matmul_dtype)
    b1, b2, bv = params["b1"], params["b2"], params["bv"]
    temp = params["temperature"]

    vmem_bytes = _vmem_limit([
        2 * _nbytes((tb, Dc), matmul_dtype), 2 * _nbytes((tb, Di), matmul_dtype),
        _nbytes((Dc, L), matmul_dtype), _nbytes((L, L), matmul_dtype),
        _nbytes((Di, L), matmul_dtype), 3 * _nbytes((1, L), jnp.float32),
        4 * _nbytes((tb, L), jnp.float32), 2 * _nbytes((1, tb), jnp.float32),
    ])

    smem = pltpu.MemorySpace.SMEM
    cad_lat, img_lat, sims = pl.pallas_call(
        clip_proj_kernel,
        out_shape=(
            jax.ShapeDtypeStruct((B, L), jnp.float32),   # cad_latents
            jax.ShapeDtypeStruct((B, L), jnp.float32),   # image_latents
            jax.ShapeDtypeStruct((1, B), jnp.float32),   # sims, lane-dense
        ),
        grid=grid,
        in_specs=[
            pl.BlockSpec((tb, Dc), lambda i: (i, 0)),
            pl.BlockSpec((tb, Di), lambda i: (i, 0)),
            pl.BlockSpec((Dc, L), lambda i: (0, 0)),
            pl.BlockSpec((1, L), lambda i: (0, 0)),
            pl.BlockSpec((L, L), lambda i: (0, 0)),
            pl.BlockSpec((1, L), lambda i: (0, 0)),
            pl.BlockSpec((Di, L), lambda i: (0, 0)),
            pl.BlockSpec((1, L), lambda i: (0, 0)),
            pl.BlockSpec(memory_space=smem),             # temperature scalar
        ],
        out_specs=(
            pl.BlockSpec((tb, L), lambda i: (i, 0)),
            pl.BlockSpec((tb, L), lambda i: (i, 0)),
            pl.BlockSpec((1, tb), lambda i: (0, i)),
        ),
        compiler_params=pltpu.CompilerParams(
            dimension_semantics=("parallel",),
            vmem_limit_bytes=vmem_bytes),
    )(cad_e, img_e, w1, b1, w2, b2, wv, bv, temp)
    return cad_lat, img_lat, sims[0]


def clip_contrastive_loss(cad_lat, img_lat, sims, temperature):
    B, L = cad_lat.shape
    vmem_bytes = _vmem_limit([
        2 * _nbytes((B, L), jnp.float32), _nbytes((1, B), jnp.float32),
        3 * _nbytes((B, B), jnp.float32),
    ])
    vmem = pltpu.MemorySpace.VMEM
    smem = pltpu.MemorySpace.SMEM
    loss = pl.pallas_call(
        clip_loss_kernel,
        out_shape=jax.ShapeDtypeStruct((1, 1), jnp.float32),
        in_specs=[
            pl.BlockSpec(memory_space=vmem),
            pl.BlockSpec(memory_space=vmem),
            pl.BlockSpec(memory_space=vmem),
            pl.BlockSpec(memory_space=smem),
        ],
        out_specs=pl.BlockSpec(memory_space=vmem),
        compiler_params=pltpu.CompilerParams(vmem_limit_bytes=vmem_bytes),
    )(cad_lat, img_lat, sims[None, :], temperature)
    return loss[0, 0]


# ----------------------------------------------------------------------------
# Deterministic parameter init (PyTorch nn.Linear-style uniform)
# ----------------------------------------------------------------------------
def _linear_init(key, fan_in, fan_out):
    kw, kb = jax.random.split(key)
    bound = 1.0 / (fan_in ** 0.5)
    w = jax.random.uniform(kw, (fan_in, fan_out), jnp.float32, -bound, bound)
    b = jax.random.uniform(kb, (1, fan_out), jnp.float32, -bound, bound)
    return w, b


def init_clip_params(key, dim_cad, dim_image, dim_latent):
    # NOTE: for lane-dense MXU/store efficiency, dim_latent (and ideally
    # dim_cad/dim_image) should be multiples of 128 in production.
    k1, k2, k3, k4 = jax.random.split(key, 4)
    w1, b1 = _linear_init(k1, dim_cad, dim_latent)
    w2, b2 = _linear_init(k2, dim_latent, dim_latent)
    wv, bv = _linear_init(k3, dim_image, dim_latent)
    # stand-in cad encoder weight (external frozen module in the original)
    cad_enc_w = jax.random.normal(k4, (1 + 4, dim_cad), jnp.float32) * 0.1
    return {
        "w1": w1, "b1": b1, "w2": w2, "b2": b2, "wv": wv, "bv": bv,
        "temperature": jnp.ones((1, 1), jnp.float32),  # nn.Parameter(tensor(1.0))
        "cad_enc_w": cad_enc_w,
    }


# ----------------------------------------------------------------------------
# Encoder stand-ins (plain JAX glue) + forward wrapper
# ----------------------------------------------------------------------------
def cad_encoder_stub(batch_cmd, batch_args, params):
    # (B, S) int cmds, (B, S, A) float args -> (B, 1, dim_cad)
    feat = jnp.concatenate(
        [batch_cmd.astype(jnp.float32).mean(axis=1, keepdims=True),
         batch_args.mean(axis=1)], axis=-1)                       # (B, 1+A)
    enc = jnp.tanh(feat @ params["cad_enc_w"])                    # (B, dim_cad)
    return enc[:, None, :]                                        # (B, 1, dim_cad)


def image_encoder_stub(image):
    # NCHW -> flattened features, matching dim_image = C*H*W
    B = image.shape[0]
    return image.reshape(B, -1)


def clip_forward(cad, image, params, return_loss=False, return_latents=False,
                 matmul_dtype=jnp.float32):
    enc_cad = cad_encoder_stub(cad[0], cad[1], params)
    enc_image = image_encoder_stub(image)
    # squeeze only the singleton sequence axis (torch .squeeze() would also
    # drop a batch dim of 1)
    cad_embeds = enc_cad[:, 0, :] if enc_cad.ndim == 3 else enc_cad
    image_embeds = enc_image

    cad_lat, img_lat, sims = clip_project(
        cad_embeds, image_embeds, params, matmul_dtype=matmul_dtype)
    if return_latents:
        return cad_lat, img_lat
    if not return_loss:
        return sims
    # loss epilogue only runs (and latents only feed it) when requested
    return clip_contrastive_loss(cad_lat, img_lat, sims, params["temperature"])


# ----------------------------------------------------------------------------
# Pure-JAX reference (faithful to the original PyTorch math) for verification
# ----------------------------------------------------------------------------
def clip_forward_ref(cad, image, params, return_loss=False):
    enc_cad = cad_encoder_stub(cad[0], cad[1], params)
    cad_embeds = enc_cad[:, 0, :]
    image_embeds = image_encoder_stub(image)

    cad_lat = jnp.tanh(
        (cad_embeds @ params["w1"] + params["b1"]) @ params["w2"] + params["b2"])
    img_lat = jnp.tanh(image_embeds @ params["wv"] + params["bv"])
    cad_lat = cad_lat / jnp.maximum(
        jnp.linalg.norm(cad_lat, axis=-1, keepdims=True), 1e-12)
    img_lat = img_lat / jnp.maximum(
        jnp.linalg.norm(img_lat, axis=-1, keepdims=True), 1e-12)
    temp = jnp.exp(params["temperature"][0, 0])
    if not return_loss:
        return jnp.sum(cad_lat * img_lat, axis=-1) * temp
    sim = (cad_lat @ img_lat.T) * temp
    c2i_exp, i2c_exp = jnp.exp(sim), jnp.exp(sim.T)
    pos_c2i, pos_i2c = jnp.diagonal(c2i_exp), jnp.diagonal(i2c_exp)
    den_c2i, den_i2c = c2i_exp.sum(-1), i2c_exp.sum(-1)
    l_c2i = jnp.mean(-jnp.log(pos_c2i + 1e-20) + jnp.log(den_c2i + 1e-20))
    l_i2c = jnp.mean(-jnp.log(pos_i2c + 1e-20) + jnp.log(den_i2c + 1e-20))
    return (l_c2i + l_i2c) / 2.0


# ----------------------------------------------------------------------------
if __name__ == "__main__":
    key = jax.random.PRNGKey(0)
    k_img, k_cmd, k_args, k_params = jax.random.split(key, 4)

    # small, lane-aligned shapes consistent with the module's forward
    B, C, H, W = 8, 4, 8, 8            # image NCHW
    S, A = 6, 4                        # cad: (cmd, args) sequences
    DIM_CAD, DIM_IMAGE, DIM_LATENT = 128, C * H * W, 128

    image = jax.random.normal(k_img, (B, C, H, W), jnp.float32)
    batch_cmd = jax.random.randint(k_cmd, (B, S), 0, 6, jnp.int32)
    batch_args = jax.random.normal(k_args, (B, S, A), jnp.float32)
    cad = (batch_cmd, batch_args)

    params = init_clip_params(k_params, DIM_CAD, DIM_IMAGE, DIM_LATENT)

    # forward: similarity path (return_loss=False) and loss path (return_loss=True)
    sims = jax.block_until_ready(clip_forward(cad, image, params, return_loss=False))
    loss = jax.block_until_ready(clip_forward(cad, image, params, return_loss=True))

    sims_ref = clip_forward_ref(cad, image, params, return_loss=False)
    loss_ref = clip_forward_ref(cad, image, params, return_loss=True)

    assert sims.shape == (B,)
    assert jnp.allclose(sims, sims_ref, atol=1e-4, rtol=1e-4)
    assert jnp.allclose(loss, loss_ref, atol=1e-4, rtol=1e-4)
    assert bool(jnp.isfinite(loss))

    # bf16 MXU-fed path (production perf mode): run and sanity-check finiteness
    sims_bf16 = jax.block_until_ready(
        clip_forward(cad, image, params, return_loss=False,
                     matmul_dtype=jnp.bfloat16))
    loss_bf16 = jax.block_until_ready(
        clip_forward(cad, image, params, return_loss=True,
                     matmul_dtype=jnp.bfloat16))
    assert sims_bf16.shape == (B,)
    assert bool(jnp.all(jnp.isfinite(sims_bf16)))
    assert bool(jnp.isfinite(loss_bf16))

    print("KERNEL_OK")
</pallas_src>

<mosaic_0001>
module attributes {stable_mosaic.version = 11 : i64} {
  func.func @clip_proj_kernel(%arg0: i32, %arg1: memref<8x128xf32, #tpu.memory_space<vmem>>, %arg2: memref<8x256xf32, #tpu.memory_space<vmem>>, %arg3: memref<128x128xf32, #tpu.memory_space<vmem>>, %arg4: memref<1x128xf32, #tpu.memory_space<vmem>>, %arg5: memref<128x128xf32, #tpu.memory_space<vmem>>, %arg6: memref<1x128xf32, #tpu.memory_space<vmem>>, %arg7: memref<256x128xf32, #tpu.memory_space<vmem>>, %arg8: memref<1x128xf32, #tpu.memory_space<vmem>>, %arg9: memref<1x1xf32, #tpu.memory_space<smem>>, %arg10: memref<8x128xf32, #tpu.memory_space<vmem>>, %arg11: memref<8x128xf32, #tpu.memory_space<vmem>>, %arg12: memref<1x8xf32, #tpu.memory_space<vmem>>) attributes {dimension_semantics = [#tpu.dimension_semantics<parallel>], iteration_bounds = array<i64: 1>, scalar_prefetch = 0 : i64, scratch_operands = 0 : i64, tpu.core_type = #tpu.core_type<tc>, window_params = [{transform_indices = @transform_0, window_bounds = array<i64: 8, 128>}, {transform_indices = @transform_1, window_bounds = array<i64: 8, 256>}, {pipeline_mode = #tpu.pipeline_mode<synchronous>, transform_indices = @transform_2, window_bounds = array<i64: 128, 128>}, {pipeline_mode = #tpu.pipeline_mode<synchronous>, transform_indices = @transform_3, window_bounds = array<i64: 1, 128>}, {pipeline_mode = #tpu.pipeline_mode<synchronous>, transform_indices = @transform_4, window_bounds = array<i64: 128, 128>}, {pipeline_mode = #tpu.pipeline_mode<synchronous>, transform_indices = @transform_5, window_bounds = array<i64: 1, 128>}, {pipeline_mode = #tpu.pipeline_mode<synchronous>, transform_indices = @transform_6, window_bounds = array<i64: 256, 128>}, {pipeline_mode = #tpu.pipeline_mode<synchronous>, transform_indices = @transform_7, window_bounds = array<i64: 1, 128>}, {transform_indices = @transform_8, window_bounds = array<i64: 1, 1>}, {transform_indices = @transform_9, window_bounds = array<i64: 8, 128>}, {transform_indices = @transform_10, window_bounds = array<i64: 8, 128>}, {transform_indices = @transform_11, window_bounds = array<i64: 1, 8>}]} {
    %c0 = arith.constant 0 : index
    %c0_0 = arith.constant 0 : index
    %0 = vector.load %arg1[%c0, %c0_0] : memref<8x128xf32, #tpu.memory_space<vmem>>, vector<8x128xf32>
    %c0_1 = arith.constant 0 : index
    %c0_2 = arith.constant 0 : index
    %1 = vector.load %arg3[%c0_1, %c0_2] : memref<128x128xf32, #tpu.memory_space<vmem>>, vector<128x128xf32>
    %cst = arith.constant dense<0.000000e+00> : vector<8x128xf32>
    %2 = tpu.matmul %0, %1, %cst {dimension_numbers = #tpu.dot_dimension_numbers<[1], [0], [0], [1], [0, 0, 1, 1], [], []>} : vector<8x128xf32>, vector<128x128xf32>, vector<8x128xf32> -> vector<8x128xf32>
    %c0_3 = arith.constant 0 : index
    %c0_4 = arith.constant 0 : index
    %3 = vector.load %arg4[%c0_3, %c0_4] : memref<1x128xf32, #tpu.memory_space<vmem>>, vector<1x128xf32>
    %4 = vector.broadcast %3 : vector<1x128xf32> to vector<8x128xf32>
    %5 = arith.addf %2, %4 : vector<8x128xf32>
    %c0_5 = arith.constant 0 : index
    %c0_6 = arith.constant 0 : index
    %6 = vector.load %arg5[%c0_5, %c0_6] : memref<128x128xf32, #tpu.memory_space<vmem>>, vector<128x128xf32>
    %cst_7 = arith.constant dense<0.000000e+00> : vector<8x128xf32>
    %7 = tpu.matmul %5, %6, %cst_7 {dimension_numbers = #tpu.dot_dimension_numbers<[1], [0], [0], [1], [0, 0, 1, 1], [], []>} : vector<8x128xf32>, vector<128x128xf32>, vector<8x128xf32> -> vector<8x128xf32>
    %c0_8 = arith.constant 0 : index
    %c0_9 = arith.constant 0 : index
    %8 = vector.load %arg6[%c0_8, %c0_9] : memref<1x128xf32, #tpu.memory_space<vmem>>, vector<1x128xf32>
    %9 = vector.broadcast %8 : vector<1x128xf32> to vector<8x128xf32>
    %10 = arith.addf %7, %9 : vector<8x128xf32>
    %11 = math.tanh %10 : vector<8x128xf32>
    %c0_10 = arith.constant 0 : index
    %c0_11 = arith.constant 0 : index
    %12 = vector.load %arg2[%c0_10, %c0_11] : memref<8x256xf32, #tpu.memory_space<vmem>>, vector<8x256xf32>
    %c0_12 = arith.constant 0 : index
    %c0_13 = arith.constant 0 : index
    %13 = vector.load %arg7[%c0_12, %c0_13] : memref<256x128xf32, #tpu.memory_space<vmem>>, vector<256x128xf32>
    %cst_14 = arith.constant dense<0.000000e+00> : vector<8x128xf32>
    %14 = tpu.matmul %12, %13, %cst_14 {dimension_numbers = #tpu.dot_dimension_numbers<[1], [0], [0], [1], [0, 0, 1, 1], [], []>} : vector<8x256xf32>, vector<256x128xf32>, vector<8x128xf32> -> vector<8x128xf32>
    %c0_15 = arith.constant 0 : index
    %c0_16 = arith.constant 0 : index
    %15 = vector.load %arg8[%c0_15, %c0_16] : memref<1x128xf32, #tpu.memory_space<vmem>>, vector<1x128xf32>
    %16 = vector.broadcast %15 : vector<1x128xf32> to vector<8x128xf32>
    %17 = arith.addf %14, %16 : vector<8x128xf32>
    %18 = math.tanh %17 : vector<8x128xf32>
    %19 = arith.mulf %11, %11 : vector<8x128xf32>
    %cst_17 = arith.constant dense<0.000000e+00> : vector<8xf32>
    %20 = vector.multi_reduction <add>, %19, %cst_17 [1] : vector<8x128xf32> to vector<8xf32>
    %21 = vector.shape_cast %20 : vector<8xf32> to vector<8x1xf32>
    %cst_18 = arith.constant 1.000000e-24 : f32
    %22 = vector.broadcast %cst_18 : f32 to vector<8x1xf32>
    %23 = arith.maximumf %21, %22 : vector<8x1xf32>
    %24 = math.rsqrt %23 : vector<8x1xf32>
    %25 = vector.broadcast %24 : vector<8x1xf32> to vector<8x128xf32>
    %26 = arith.mulf %11, %25 : vector<8x128xf32>
    %27 = arith.mulf %18, %18 : vector<8x128xf32>
    %cst_19 = arith.constant dense<0.000000e+00> : vector<8xf32>
    %28 = vector.multi_reduction <add>, %27, %cst_19 [1] : vector<8x128xf32> to vector<8xf32>
    %29 = vector.shape_cast %28 : vector<8xf32> to vector<8x1xf32>
    %cst_20 = arith.constant 1.000000e-24 : f32
    %30 = vector.broadcast %cst_20 : f32 to vector<8x1xf32>
    %31 = arith.maximumf %29, %30 : vector<8x1xf32>
    %32 = math.rsqrt %31 : vector<8x1xf32>
    %33 = vector.broadcast %32 : vector<8x1xf32> to vector<8x128xf32>
    %34 = arith.mulf %18, %33 : vector<8x128xf32>
    %c0_21 = arith.constant 0 : index
    %c0_22 = arith.constant 0 : index
    %35 = vector.load %arg10[%c0_21, %c0_22] : memref<8x128xf32, #tpu.memory_space<vmem>>, vector<8x128xf32>
    tpu.vector_store %arg10[%c0_21, %c0_22], %26 {strides = array<i32>} : memref<8x128xf32, #tpu.memory_space<vmem>>, vector<8x128xf32>,
    %c0_23 = arith.constant 0 : index
    %c0_24 = arith.constant 0 : index
    %36 = vector.load %arg11[%c0_23, %c0_24] : memref<8x128xf32, #tpu.memory_space<vmem>>, vector<8x128xf32>
    tpu.vector_store %arg11[%c0_23, %c0_24], %34 {strides = array<i32>} : memref<8x128xf32, #tpu.memory_space<vmem>>, vector<8x128xf32>,
    %c0_25 = arith.constant 0 : index
    %c0_26 = arith.constant 0 : index
    %37 = memref.load %arg9[%c0_25, %c0_26] : memref<1x1xf32, #tpu.memory_space<smem>>
    %38 = math.exp %37 : f32
    %39 = arith.mulf %26, %34 : vector<8x128xf32>
    %cst_27 = arith.constant 1.000000e+00 : f32
    %40 = vector.broadcast %cst_27 : f32 to vector<1x128xf32>
    %cst_28 = arith.constant dense<0.000000e+00> : vector<1x8xf32>
    %41 = tpu.matmul %40, %39, %cst_28 {dimension_numbers = #tpu.dot_dimension_numbers<[1], [1], [0], [0], [0, 0, 1, 0], [], []>} : vector<1x128xf32>, vector<8x128xf32>, vector<1x8xf32> -> vector<1x8xf32>
    %42 = vector.broadcast %38 : f32 to vector<1x8xf32>
    %43 = arith.mulf %41, %42 : vector<1x8xf32>
    %c0_29 = arith.constant 0 : index
    %c0_30 = arith.constant 0 : index
    %44 = vector.load %arg12[%c0_29, %c0_30] : memref<1x8xf32, #tpu.memory_space<vmem>>, vector<1x8xf32>
    tpu.vector_store %arg12[%c0_29, %c0_30], %43 {strides = array<i32>} : memref<1x8xf32, #tpu.memory_space<vmem>>, vector<1x8xf32>,
    return
  }
  func.func @transform_0(%arg0: i32) -> (i32, i32) {
    %c0_i32 = arith.constant 0 : i32
    %c0_i32_0 = arith.constant 0 : i32
    return %arg0, %c0_i32 : i32, i32
  }
  func.func @transform_1(%arg0: i32) -> (i32, i32) {
    %c0_i32 = arith.constant 0 : i32
    %c0_i32_0 = arith.constant 0 : i32
    return %arg0, %c0_i32 : i32, i32
  }
  func.func @transform_2(%arg0: i32) -> (i32, i32) {
    %c0_i32 = arith.constant 0 : i32
    %c0_i32_0 = arith.constant 0 : i32
    %c0_i32_1 = arith.constant 0 : i32
    return %c0_i32, %c0_i32_0 : i32, i32
  }
  func.func @transform_3(%arg0: i32) -> (i32, i32) {
    %c0_i32 = arith.constant 0 : i32
    %c0_i32_0 = arith.constant 0 : i32
    %c0_i32_1 = arith.constant 0 : i32
    return %c0_i32, %c0_i32_0 : i32, i32
  }
  func.func @transform_4(%arg0: i32) -> (i32, i32) {
    %c0_i32 = arith.constant 0 : i32
    %c0_i32_0 = arith.constant 0 : i32
    %c0_i32_1 = arith.constant 0 : i32
    return %c0_i32, %c0_i32_0 : i32, i32
  }
  func.func @transform_5(%arg0: i32) -> (i32, i32) {
    %c0_i32 = arith.constant 0 : i32
    %c0_i32_0 = arith.constant 0 : i32
    %c0_i32_1 = arith.constant 0 : i32
    return %c0_i32, %c0_i32_0 : i32, i32
  }
  func.func @transform_6(%arg0: i32) -> (i32, i32) {
    %c0_i32 = arith.constant 0 : i32
    %c0_i32_0 = arith.constant 0 : i32
    %c0_i32_1 = arith.constant 0 : i32
    return %c0_i32, %c0_i32_0 : i32, i32
  }
  func.func @transform_7(%arg0: i32) -> (i32, i32) {
    %c0_i32 = arith.constant 0 : i32
    %c0_i32_0 = arith.constant 0 : i32
    %c0_i32_1 = arith.constant 0 : i32
    return %c0_i32, %c0_i32_0 : i32, i32
  }
  func.func @transform_8(%arg0: i32) -> (i32, i32) {
    %c0_i32 = arith.constant 0 : i32
    %c0_i32_0 = arith.constant 0 : i32
    %c0_i32_1 = arith.constant 0 : i32
    return %c0_i32, %c0_i32_0 : i32, i32
  }
  func.func @transform_9(%arg0: i32) -> (i32, i32) {
    %c0_i32 = arith.constant 0 : i32
    %c0_i32_0 = arith.constant 0 : i32
    return %arg0, %c0_i32 : i32, i32
  }
  func.func @transform_10(%arg0: i32) -> (i32, i32) {
    %c0_i32 = arith.constant 0 : i32
    %c0_i32_0 = arith.constant 0 : i32
    return %arg0, %c0_i32 : i32, i32
  }
  func.func @transform_11(%arg0: i32) -> (i32, i32) {
    %c0_i32 = arith.constant 0 : i32
    %c0_i32_0 = arith.constant 0 : i32
    return %c0_i32, %arg0 : i32, i32
  }
}

</mosaic_0001>

<bundles_post_ra>
// kernel: tpu_custom_call.1
= control target key start
LH: loop header
LB: loop body
LE: loop exit
PB: predicated region body
PF: predicated region fallthrough
CT: control target
= control target key end

     0   :  { %18 = vsyncpa [#allocation4], 0  ;;  %s1195_s0 = inlined_call_operand.hbm [shape: f32[8,128], index: 0, kind: input, shape index: {}]   ;;  %s1196_s1 = inlined_call_operand.hbm [shape: f32[8,256], index: 1, kind: input, shape index: {}]   ;;  %s1197_s2 = inlined_call_operand.hbm [shape: f32[128,128], index: 2, kind: input, shape index: {}]   ;;  %s1198_s3 = inlined_call_operand.vmem [shape: f32[1,128], index: 3, kind: input, shape index: {}]   ;;  %s1199_s4 = inlined_call_operand.hbm [shape: f32[128,128], index: 4, kind: input, shape index: {}]   ;;  %s1200_s5 = inlined_call_operand.vmem [shape: f32[1,128], index: 5, kind: input, shape index: {}]   ;;  %s1201_s6 = inlined_call_operand.hbm [shape: f32[256,128], index: 6, kind: input, shape index: {}]   ;;  %s1202_s7 = inlined_call_operand.vmem [shape: f32[1,128], index: 7, kind: input, shape index: {}]   ;;  %s1203_s8 = inlined_call_operand.<no memory space> [shape: f32[1,1], index: 8, kind: input, shape index: {}]   ;;  %s1204_s9 = inlined_call_operand.hbm [shape: f32[8,128], index: 9, kind: output, shape index: {0}]   ;;  %s1205_s10 = inlined_call_operand.hbm [shape: f32[8,128], index: 10, kind: output, shape index: {1}]   ;;  %s1206_s11 = inlined_call_operand.hbm [shape: f32[1,8], index: 11, kind: output, shape index: {2}]  }
   0x1   :  { %19 = vsyncpa [#allocation7], 0 }
   0x2   :  { %20 = vsyncpa [#allocation10], 0 }
   0x3   :  { %21 = vsyncpa [#allocation5], 0 }
   0x4   :  { %22 = vsyncpa [#allocation14], 0  ;;  %s981_s17 = smov [#allocation6]   ;;  %s795_s21 = scalar_lea.hbm %s1196_s1, 256 }
   0x5   :  { %s39_s18 = sshll.u32 %s981_s17, 4  ;;  %p796_p0 = scmp.ne.s32.totalorder %s1196_s1, %s795_s21  ;;  %s40_s18 = int_to_ptr.vmem [resolvable:$true] %s39_s18 }
   0x6   :  { %p799_p1 = scmp.lt.u32.totalorder %s795_s21, %s1196_s1 }
   0x8   :  { %p801_p2 = pnand %p799_p1, %p796_p0 }
   0xa   :  { %804 = shalt.err (!%p801_p2)
}
   0xb   :  { %s805_s26 = scalar_lea.vmem %s40_s18, 256  ;;  %p810_p4 = scmp.lt.s32.totalorder %s40_s18, %s40_s18 }
   0xc   :  { %p806_p3 = scmp.ne.s32.totalorder %s40_s18, %s805_s26  ;;  %p811_p5 = scmp.lt.s32.totalorder %s805_s26, %s805_s26 }
   0xe   :  { %p812_p6 = por %p811_p5, %p810_p4 }
  0x10   :  { %p813_p7 = pnand %p812_p6, %p806_p3 }
  0x12   :  { %816 = shalt.err (!%p813_p7)
}
  0x13   :  { %42 = dma.hbm_to_vmem [thread:$0]  %s1196_s1, 256, %s40_s18, [#allocation7]  }
  0x14   :  { %s982_s29 = smov [#allocation9]   ;;  %s983_s12 = smov [#allocation3]  }
  0x15   :  { %s62_s30 = sshll.u32 %s982_s29, 4  ;;  %s29_s13 = sshll.u32 %s983_s12, 4  ;;  %s63_s30 = int_to_ptr.vmem [resolvable:$true] %s62_s30  ;;  %s30_s13 = int_to_ptr.vmem [resolvable:$true] %s29_s13 }
  0x16   :  { %s817_s16 = scalar_lea.hbm %s1199_s4, 2048 }
  0x17   :  { %p818_p8 = scmp.ne.s32.totalorder %s1199_s4, %s817_s16  ;;  %p821_p9 = scmp.lt.u32.totalorder %s817_s16, %s1199_s4 }
  0x19   :  { %p823_p10 = pnand %p821_p9, %p818_p8 }
  0x1b   :  { %826 = shalt.err (!%p823_p10)
}
  0x1c   :  { %s827_s1 = scalar_lea.vmem %s63_s30, 2048  ;;  %p832_p12 = scmp.lt.s32.totalorder %s63_s30, %s63_s30 }
  0x1d   :  { %p828_p11 = scmp.ne.s32.totalorder %s63_s30, %s827_s1  ;;  %p833_p13 = scmp.lt.s32.totalorder %s827_s1, %s827_s1 }
  0x1f   :  { %p834_p0 = por %p833_p13, %p832_p12 }
  0x21   :  { %p835_p1 = pnand %p834_p0, %p828_p11 }
  0x23   :  { %838 = shalt.err (!%p835_p1)
}
  0x24   :  { %s984_s18 = smov 128   ;;  %s985_s22 = smov 8  }
  0x25   :  { %68 = dma.hbm_to_vmem [thread:$0]  %s1199_s4, 2048, %s63_s30, [#allocation10], %s984_s18, %s984_s18, %s985_s22  }
  0x26   :  { %s839_s27 = scalar_lea.hbm %s1195_s0, 128 }
  0x27   :  { %p840_p2 = scmp.ne.s32.totalorder %s1195_s0, %s839_s27  ;;  %p843_p3 = scmp.lt.u32.totalorder %s839_s27, %s1195_s0 }
  0x29   :  { %p845_p4 = pnand %p843_p3, %p840_p2 }
  0x2b   :  { %848 = shalt.err (!%p845_p4)
}
  0x2c   :  { %s849_s15 = scalar_lea.vmem %s30_s13, 128  ;;  %p854_p6 = scmp.lt.s32.totalorder %s30_s13, %s30_s13 }
  0x2d   :  { %p850_p5 = scmp.ne.s32.totalorder %s30_s13, %s849_s15  ;;  %p855_p7 = scmp.lt.s32.totalorder %s849_s15, %s849_s15 }
  0x2f   :  { %p856_p8 = por %p855_p7, %p854_p6 }
  0x31   :  { %p857_p9 = pnand %p856_p8, %p850_p5 }
  0x33   :  { %860 = shalt.err (!%p857_p9)
}
  0x34   :  { %32 = dma.hbm_to_vmem [thread:$0]  %s1195_s0, 128, %s30_s13, [#allocation4]  }
  0x35   :  { %s986_s16 = smov [#allocation8]   ;;  %s987_s19 = smov [#allocation11]  }
  0x36   :  { %s48_s17 = sshll.u32 %s986_s16, 4  ;;  %s76_s20 = sshll.u32 %s987_s19, 4  ;;  %s49_s17 = int_to_ptr.vmem [resolvable:$true] %s48_s17  ;;  %s77_s20 = int_to_ptr.vmem [resolvable:$true] %s76_s20 }
  0x37   :  { %s861_s23 = scalar_lea.hbm %s1197_s2, 2048 }
  0x38   :  { %p862_p10 = scmp.ne.s32.totalorder %s1197_s2, %s861_s23  ;;  %p865_p11 = scmp.lt.u32.totalorder %s861_s23, %s1197_s2 }
  0x3a   :  { %p867_p12 = pnand %p865_p11, %p862_p10 }
  0x3c   :  { %870 = shalt.err (!%p867_p12)
}
  0x3d   :  { %s871_s0 = scalar_lea.vmem %s49_s17, 2048  ;;  %p876_p0 = scmp.lt.s32.totalorder %s49_s17, %s49_s17 }
  0x3e   :  { %p872_p13 = scmp.ne.s32.totalorder %s49_s17, %s871_s0  ;;  %p877_p1 = scmp.lt.s32.totalorder %s871_s0, %s871_s0 }
  0x40   :  { %p878_p2 = por %p877_p1, %p876_p0 }
  0x42   :  { %p879_p3 = pnand %p878_p2, %p872_p13 }
  0x44   :  { %882 = shalt.err (!%p879_p3)
}
  0x45   :  { %54 = dma.hbm_to_vmem [thread:$0]  %s1197_s2, 2048, %s49_s17, [#allocation7], %s984_s18, %s984_s18, %s985_s22  }
  0x46   :  { %s883_s14 = scalar_lea.hbm %s1201_s6, 4096 }
  0x47   :  { %p884_p4 = scmp.ne.s32.totalorder %s1201_s6, %s883_s14  ;;  %p887_p5 = scmp.lt.u32.totalorder %s883_s14, %s1201_s6 }
  0x49   :  { %p889_p6 = pnand %p887_p5, %p884_p4 }
  0x4b   :  { %892 = shalt.err (!%p889_p6)
}
  0x4c   :  { %s893_s19 = scalar_lea.vmem %s77_s20, 4096  ;;  %p898_p8 = scmp.lt.s32.totalorder %s77_s20, %s77_s20 }
  0x4d   :  { %p894_p7 = scmp.ne.s32.totalorder %s77_s20, %s893_s19  ;;  %p899_p9 = scmp.lt.s32.totalorder %s893_s19, %s893_s19 }
  0x4f   :  { %p900_p10 = por %p899_p9, %p898_p8 }
  0x51   :  { %p901_p11 = pnand %p900_p10, %p894_p7 }
  0x53   :  { %904 = shalt.err (!%p901_p11)
}
  0x54   :  { %82 = dma.hbm_to_vmem [thread:$0]  %s1201_s6, 4096, %s77_s20, [#allocation10], %s984_s18, %s984_s18, %s985_s22  }
  0x55   :  { %971 = dma.done.wait [#allocation4], 128  }
  0x56   :  { %972 = vsyncadd [#allocation4], 4294967168 }
  0x57   :  { %973 = dma.done.wait [#allocation7], 2304  }
  0x58   :  { %974 = vsyncadd [#allocation7], 4294964992 }
  0x59   :  { %975 = dma.done.wait [#allocation10], 6144  }
  0x5a   :  { %976 = vsyncadd [#allocation10], 4294961152  ;;  %v988_v0 = vmov 0.0|0.0   ;;  %vm989_vm0 = vmmov 0   ;;  %v990_v1 = vmov 0.0   ;;  %v103_v2 = vld [vmem:[#allocation8] sm:$0xff] }
  0x5b   :  { %689 = vmatprep.subr.bf16.mxu0 %v988_v0  ;;  %646 = vmatprep.mubr.msk.f32.mxu0 %vm989_vm0, %v990_v1  ;;  %v104_v3 = vld [vmem:[#allocation8 + $0x8] sm:$0xff]  ;;  %v105_v4 = vld [vmem:[#allocation8 + $0x10] sm:$0xff]  ;;  %v106_v6 = vld [vmem:[#allocation8 + $0x18] sm:$0xff] }
  0x5c   :  { %713 = vmatprep.subr.bf16.mxu1 %v988_v0  ;;  %681 = vmatprep.mubr.msk.f32.mxu1 %vm989_vm0, %v990_v1  ;;  %v690_v5 = vpack.c.bf16 %v104_v3, %v103_v2  ;;  %v693_v7 = vpack.c.bf16 %v106_v6, %v105_v4  ;;  %v107_v8 = vld [vmem:[#allocation8 + $0x20] sm:$0xff]  ;;  %v108_v9 = vld [vmem:[#allocation8 + $0x28] sm:$0xff]  ;;  %v109_v13 = vld [vmem:[#allocation8 + $0x30] sm:$0xff] }
  0x5d   :  { %v196_v10 = vld [vmem:[#allocation9] sm:$0xff]  ;;  %v197_v11 = vld [vmem:[#allocation9 + $0x8] sm:$0xff]  ;;  %v696_v12 = vpack.c.bf16 %v108_v9, %v107_v8  ;;  %v110_v15 = vld [vmem:[#allocation8 + $0x38] sm:$0xff] }
  0x5e   :  { %691 = vmatpush3.bf16.msra.mxu0 %v690_v5  ;;  %v714_v14 = vpack.c.bf16 %v197_v11, %v196_v10  ;;  %v198_v16 = vld [vmem:[#allocation9 + $0x10] sm:$0xff]  ;;  %v199_v17 = vld [vmem:[#allocation9 + $0x18] sm:$0xff]  ;;  %v200_v19 = vld [vmem:[#allocation9 + $0x20] sm:$0xff]  ;;  %v699_v21 = vpack.c.bf16 %v110_v15, %v109_v13 }
  0x5f   :  { %692 = vmatprep.subr.bf16.mxu0 %v988_v0  ;;  %v717_v18 = vpack.c.bf16 %v199_v17, %v198_v16  ;;  %v201_v20 = vld [vmem:[#allocation9 + $0x28] sm:$0xff]  ;;  %v111_v22 = vld [vmem:[#allocation8 + $0x40] sm:$0xff]  ;;  %v202_v25 = vld [vmem:[#allocation9 + $0x30] sm:$0xff] }
  0x60   :  { %715 = vmatpush3.bf16.msra.mxu1 %v714_v14  ;;  %v112_v23 = vld [vmem:[#allocation8 + $0x48] sm:$0xff]  ;;  %v720_v24 = vpack.c.bf16 %v201_v20, %v200_v19  ;;  %v203_v26 = vld [vmem:[#allocation9 + $0x38] sm:$0xff]  ;;  %v113_v28 = vld [vmem:[#allocation8 + $0x50] sm:$0xff] }
  0x61   :  { %716 = vmatprep.subr.bf16.mxu1 %v988_v0  ;;  %v702_v27 = vpack.c.bf16 %v112_v23, %v111_v22  ;;  %v114_v29 = vld [vmem:[#allocation8 + $0x58] sm:$0xff]  ;;  %v723_v30 = vpack.c.bf16 %v203_v26, %v202_v25  ;;  %v204_v31 = vld [vmem:[#allocation9 + $0x40] sm:$0xff]  ;;  %v205_v32 = vld [vmem:[#allocation9 + $0x48] sm:$0xff] }
  0x62   :  { %694 = vmatpush3.bf16.msra.mxu0 %v693_v7  ;;  %v705_v33 = vpack.c.bf16 %v114_v29, %v113_v28  ;;  %v115_v34 = vld [vmem:[#allocation8 + $0x60] sm:$0xff]  ;;  %v116_v35 = vld [vmem:[#allocation8 + $0x68] sm:$0xff]  ;;  %v726_v36 = vpack.c.bf16 %v205_v32, %v204_v31  ;;  %v206_v37 = vld [vmem:[#allocation9 + $0x50] sm:$0xff] }
  0x63   :  { %695 = vmatprep.subr.bf16.mxu0 %v988_v0  ;;  %v207_v38 = vld [vmem:[#allocation9 + $0x58] sm:$0xff]  ;;  %v708_v39 = vpack.c.bf16 %v116_v35, %v115_v34  ;;  %v117_v40 = vld [vmem:[#allocation8 + $0x70] sm:$0xff]  ;;  %v308_v42 = vld [vmem:[#allocation11 + $0x80] sm:$0xff] }
  0x64   :  { %718 = vmatpush3.bf16.msra.mxu1 %v717_v18  ;;  %v118_v41 = vld [vmem:[#allocation8 + $0x78] sm:$0xff]  ;;  %v309_v43 = vld [vmem:[#allocation11 + $0x88] sm:$0xff]  ;;  %v729_v44 = vpack.c.bf16 %v207_v38, %v206_v37  ;;  %v208_v45 = vld [vmem:[#allocation9 + $0x60] sm:$0xff] }
  0x65   :  { %719 = vmatprep.subr.bf16.mxu1 %v988_v0  ;;  %v209_v46 = vld [vmem:[#allocation9 + $0x68] sm:$0xff]  ;;  %v711_v47 = vpack.c.bf16 %v118_v41, %v117_v40  ;;  %v737_v48 = vpack.c.bf16 %v309_v43, %v308_v42  ;;  %v292_v49 = vld [vmem:[#allocation11] sm:$0xff]  ;;  %v310_v51 = vld [vmem:[#allocation11 + $0x90] sm:$0xff] }
  0x66   :  { %697 = vmatpush3.bf16.msra.mxu0 %v696_v12  ;;  %v293_v50 = vld [vmem:[#allocation11 + $0x8] sm:$0xff]  ;;  %v311_v52 = vld [vmem:[#allocation11 + $0x98] sm:$0xff]  ;;  %v732_v53 = vpack.c.bf16 %v209_v46, %v208_v45  ;;  %v294_v57 = vld [vmem:[#allocation11 + $0x10] sm:$0xff] }
  0x67   :  { %698 = vmatprep.subr.bf16.mxu0 %v988_v0  ;;  %v102_v54 = vld [vmem:[#allocation3] sm:$0xff]  ;;  %v739_v55 = vpack.c.bf16 %v293_v50, %v292_v49  ;;  %v741_v56 = vpack.c.bf16 %v311_v52, %v310_v51  ;;  %v295_v58 = vld [vmem:[#allocation11 + $0x18] sm:$0xff]  ;;  %v312_v59 = vld [vmem:[#allocation11 + $0xa0] sm:$0xff] }
  0x68   :  { %721 = vmatpush3.bf16.msra.mxu1 %v720_v24  ;;  %v313_v60 = vld [vmem:[#allocation11 + $0xa8] sm:$0xff]  ;;  %v743_v61 = vpack.c.bf16 %v295_v58, %v294_v57  ;;  %v296_v63 = vld [vmem:[#allocation11 + $0x20] sm:$0xff]  ;;  %v314_v3 = vld [vmem:[#allocation11 + $0xb0] sm:$0xff] }
  0x69   :  { %722 = vmatprep.subr.bf16.mxu1 %v988_v0  ;;  %v745_v62 = vpack.c.bf16 %v313_v60, %v312_v59  ;;  %v297_v2 = vld [vmem:[#allocation11 + $0x28] sm:$0xff]  ;;  %v315_v4 = vld [vmem:[#allocation11 + $0xb8] sm:$0xff]  ;;  %v298_v7 = vld [vmem:[#allocation11 + $0x30] sm:$0xff] }
  0x6a   :  { %700 = vmatpush3.bf16.msra.mxu0 %v699_v21  ;;  %v747_v5 = vpack.c.bf16 %v297_v2, %v296_v63  ;;  %v749_v6 = vpack.c.bf16 %v315_v4, %v314_v3  ;;  %v299_v8 = vld [vmem:[#allocation11 + $0x38] sm:$0xff]  ;;  %v316_v9 = vld [vmem:[#allocation11 + $0xc0] sm:$0xff]  ;;  %v317_v10 = vld [vmem:[#allocation11 + $0xc8] sm:$0xff]  ;;  %v991_v4 = vmov 1.0  }
  0x6b   :  { %701 = vmatprep.subr.bf16.mxu0 %v988_v0  ;;  %v751_v11 = vpack.c.bf16 %v299_v8, %v298_v7  ;;  %v300_v12 = vld [vmem:[#allocation11 + $0x40] sm:$0xff]  ;;  %v301_v13 = vld [vmem:[#allocation11 + $0x48] sm:$0xff]  ;;  %v318_v14 = vld [vmem:[#allocation11 + $0xd0] sm:$0xff] }
  0x6c   :  { %724 = vmatpush3.bf16.msra.mxu1 %v723_v30  ;;  %v319_v15 = vld [vmem:[#allocation11 + $0xd8] sm:$0xff]  ;;  %v755_v16 = vpack.c.bf16 %v301_v13, %v300_v12  ;;  %v302_v18 = vld [vmem:[#allocation11 + $0x50] sm:$0xff]  ;;  %v320_v20 = vld [vmem:[#allocation11 + $0xe0] sm:$0xff] }
  0x6d   :  { %725 = vmatprep.subr.bf16.mxu1 %v988_v0  ;;  %v757_v17 = vpack.c.bf16 %v319_v15, %v318_v14  ;;  %v303_v19 = vld [vmem:[#allocation11 + $0x58] sm:$0xff]  ;;  %v321_v21 = vld [vmem:[#allocation11 + $0xe8] sm:$0xff]  ;;  %v304_v24 = vld [vmem:[#allocation11 + $0x60] sm:$0xff] }
  0x6e   :  { %703 = vmatpush3.bf16.msra.mxu0 %v702_v27  ;;  %v759_v22 = vpack.c.bf16 %v303_v19, %v302_v18  ;;  %v761_v23 = vpack.c.bf16 %v321_v21, %v320_v20  ;;  %v305_v25 = vld [vmem:[#allocation11 + $0x68] sm:$0xff]  ;;  %v322_v26 = vld [vmem:[#allocation11 + $0xf0] sm:$0xff]  ;;  %v323_v27 = vld [vmem:[#allocation11 + $0xf8] sm:$0xff] }
  0x6f   :  { %704 = vmatprep.subr.bf16.mxu0 %v988_v0  ;;  %v763_v28 = vpack.c.bf16 %v305_v25, %v304_v24  ;;  %v765_v29 = vpack.c.bf16 %v323_v27, %v322_v26  ;;  %v210_v30 = vld [vmem:[#allocation9 + $0x70] sm:$0xff]  ;;  %v211_v31 = vld [vmem:[#allocation9 + $0x78] sm:$0xff]  ;;  %v540_v38 = vld [vmem:[%s1198_s3] ss:$0 sm:$0xff] }
  0x70   :  { %727 = vmatpush3.bf16.msra.mxu1 %v726_v36  ;;  %v306_v32 = vld [vmem:[#allocation11 + $0x70] sm:$0xff]  ;;  %v307_v34 = vld [vmem:[#allocation11 + $0x78] sm:$0xff]  ;;  %v542_v45 = vld [vmem:[%s1202_s7] ss:$0 sm:$0xff] }
  0x71   :  { %728 = vmatprep.subr.bf16.mxu1 %v988_v0  ;;  %v767_v35 = vpack.c.bf16 %v307_v34, %v306_v32  ;;  %v291_v36 = vld [vmem:[#allocation6 + $0x8] sm:$0xff]  ;;  %v290_v37 = vld [vmem:[#allocation6] sm:$0xff]  ;;  %v541_v46 = vld [vmem:[%s1200_s5] ss:$0 sm:$0xff]  ;;  %s992_s5 = smov [#allocation13]  }
  0x72   :  { %706 = vmatpush3.bf16.msra.mxu0 %v705_v33  ;;  %v735_v33 = vpack.c.bf16 %v211_v31, %v210_v30  ;;  %s512_s7 = sshll.u32 %s992_s5, 4  ;;  %s513_s7 = int_to_ptr.vmem [resolvable:$true] %s512_s7 }
  0x73   :  { %707 = vmatprep.subr.bf16.mxu0 %v988_v0  ;;  %s905_s25 = scalar_lea.vmem %s513_s7, 128  ;;  %p910_p13 = scmp.lt.s32.totalorder %s513_s7, %s513_s7 }
  0x74   :  { %730 = vmatpush3.bf16.msra.mxu1 %v729_v44  ;;  %p906_p12 = scmp.ne.s32.totalorder %s513_s7, %s905_s25  ;;  %p911_p0 = scmp.lt.s32.totalorder %s905_s25, %s905_s25 }
  0x75   :  { %731 = vmatprep.subr.bf16.mxu1 %v988_v0 }
  0x76   :  { %709 = vmatpush3.bf16.msra.mxu0 %v708_v39  ;;  %p912_p1 = por %p911_p0, %p910_p13 }
  0x77   :  { %710 = vmatprep.subr.bf16.mxu0 %v988_v0 }
  0x78   :  { %733 = vmatpush3.bf16.msra.mxu1 %v732_v53  ;;  %p913_p2 = pnand %p912_p1, %p906_p12 }
  0x79   :  { %734 = vmatprep.subr.bf16.mxu1 %v988_v0  ;;  %v753_v0 = vpack.c.bf16 %v317_v10, %v316_v9 }
  0x7a   :  { %712 = vmatpush3.bf16.msra.mxu0 %v711_v47 }
  0x7b   :  { %738 = vmatprep.subr.bf16.mxu0 %v737_v48 }
  0x7c   :  { %736 = vmatpush3.bf16.msra.mxu1 %v735_v33 }
  0x7d   :  { %647 = vmatmul.mubr.f32.vlgmr.msra.gmra.mrb[0].mxu0 %v102_v54  ;;  %684 = vmatprep.subr.mxu1 %v990_v1  ;;  %v417_v54 = vstv %s1203_s8  ;;  %s993_s8 = smov [#allocation12]  }
  0x7e   :  { %740 = vmatpush3.bf16.msra.mxu0 %v739_v55  ;;  %395 = vmatprep.mubr.f32.mxu0 %v291_v36  ;;  %v418_v55 = vmul.f32 1.442695, %v417_v54  ;;  %s502_s24 = sshll.u32 %s993_s8, 4  ;;  %s503_s24 = int_to_ptr.vmem [resolvable:$true] %s502_s24 }
  0x7f   :  { %742 = vmatprep.subr.bf16.mxu0 %v741_v56 }
  0x82   :  { %744 = vmatpush3.bf16.msra.mxu0 %v743_v61 }
  0x83   :  { %746 = vmatprep.subr.bf16.mxu0 %v745_v62 }
  0x86   :  { %748 = vmatpush3.bf16.msra.mxu0 %v747_v5 }
  0x87   :  { %750 = vmatprep.subr.bf16.mxu0 %v749_v6 }
  0x8a   :  { %752 = vmatpush3.bf16.msra.mxu0 %v751_v11 }
  0x8b   :  { %754 = vmatprep.subr.bf16.mxu0 %v753_v0 }
  0x8e   :  { %756 = vmatpush3.bf16.msra.mxu0 %v755_v16 }
  0x8f   :  { %758 = vmatprep.subr.bf16.mxu0 %v757_v17 }
  0x92   :  { %760 = vmatpush3.bf16.msra.mxu0 %v759_v22 }
  0x93   :  { %762 = vmatprep.subr.bf16.mxu0 %v761_v23 }
  0x96   :  { %764 = vmatpush3.bf16.msra.mxu0 %v763_v28 }
  0x97   :  { %766 = vmatprep.subr.bf16.mxu0 %v765_v29 }
  0x9a   :  { %768 = vmatpush3.bf16.msra.mxu0 %v767_v35 }
  0x9d   :  { %396 = vmatmul.mubr.f32.vlgmr.msra.gmra.mrb[2].mxu0 %v290_v37 }
 0x150   :  { %v192_v39 = vpop.f32.mrb[0].mxu0 }
 0x151   :  { %v193_v40 = vadd.f32 %v540_v38, %v192_v39  ;;  %v648_v41 = vpop.f32.mrb[1].mxu0 }
 0x153   :  { %682 = vmatmul.mubr.f32.vlgmr.msra.gmra.mrb[0].mxu1 %v193_v40 }
 0x154   :  { %686 = vmatprep.mubr.msk.f32.mxu1 %vm989_vm0, %v990_v1 }
 0x170   :  { %v609_v42 = vpop.f32.mrb[2].mxu0 }
 0x171   :  { %v610_v43 = vpop.f32.mrb[3].mxu0 }
 0x172   :  { %v611_v44 = vadd.f32 %v610_v43, %v609_v42 }
 0x174   :  { %v398_v47 = vadd.f32 %v611_v44, %v542_v45 }
 0x176   :  { %785 = vtanh.f32 %v398_v47 }
 0x180   :  { %v786_v51 = vpop.eup %785 }
 0x181   :  { %v408_v53 = vmul.f32 %v786_v51, %v786_v51 }
 0x226   :  { %v285_v48 = vpop.f32.mrb[0].mxu1 }
 0x227   :  { %v286_v49 = vadd.f32 %v541_v46, %v285_v48  ;;  %v683_v50 = vpop.f32.mrb[1].mxu1 }
 0x229   :  { %787 = vtanh.f32 %v286_v49 }
 0x22a   :  { %789 = vpow2.f32 %v418_v55 }
 0x233   :  { %v788_v52 = vpop.eup %787 }
 0x234   :  { %v402_v1 = vmul.f32 %v788_v52, %v788_v52  ;;  %v790_v56 = vpop.eup %789 }
 0x235   :  { %769 = vpush %v790_v56 }
 0x236   :  { %403 = vadd.xlane.f32.xlu0 %v402_v1 }
 0x23a   :  { %409 = vadd.xlane.f32.xlu0 %v408_v53 }
 0x2c3   :  { %v404_v57 = vpop.xlane.xlu0 %403 }
 0x2c4   :  { %v405_v58 = vmax.f32 %v404_v57, 1e-24 }
 0x2c6   :  { %791 = vrsqrt.f32 %v405_v58 }
 0x2c7   :  { %v410_v59 = vpop.xlane.xlu0 %409 }
 0x2c8   :  { %v411_v60 = vmax.f32 %v410_v59, 1e-24 }
 0x2ca   :  { %793 = vrsqrt.f32 %v411_v60 }
 0x2d0   :  { %v792_v61 = vpop.eup %791 }
 0x2d1   :  { %v407_v62 = vmul.f32 %v792_v61, %v788_v52 }
 0x2d3   :  { %414 = vst [vmem:[#allocation12] sm:$0xff] %v407_v62 }
 0x2d4   :  { %v794_v63 = vpop.eup %793 }
 0x2d5   :  { %v413_v2 = vmul.f32 %v794_v63, %v786_v51 }
 0x2d7   :  { %v421_v3 = vmul.f32 %v413_v2, %v407_v62  ;;  %415 = vst [vmem:[#allocation13] sm:$0xff] %v413_v2 }
 0x2d9   :  { %685 = vmatpush3.xpose.msra.mxu1 %v421_v3 }
 0x2dc   :  { %687 = vmatmul.mubr.f32.vlgmr.msra.gmra.mrb[2].mxu1 %v991_v4 }
 0x2dd   :  { %916 = shalt.err (!%p913_p2)
}
 0x2de   :  { %s917_s0 = scalar_lea.hbm %s1205_s10, 128 }
 0x2df   :  { %p918_p3 = scmp.ne.s32.totalorder %s1205_s10, %s917_s0  ;;  %p921_p4 = scmp.lt.u32.totalorder %s917_s0, %s1205_s10 }
 0x2e1   :  { %p923_p5 = pnand %p921_p4, %p918_p3 }
 0x2e3   :  { %926 = shalt.err (!%p923_p5)
}
 0x2e4   :  { %515 = dma.vmem_to_hbm [thread:$0]  %s513_s7, 128, %s1205_s10, [#allocation14]  }
 0x2e5   :  { %s927_s4 = scalar_lea.vmem %s503_s24, 128  ;;  %p932_p7 = scmp.lt.s32.totalorder %s503_s24, %s503_s24 }
 0x2e6   :  { %p928_p6 = scmp.ne.s32.totalorder %s503_s24, %s927_s4  ;;  %p933_p8 = scmp.lt.s32.totalorder %s927_s4, %s927_s4 }
 0x2e8   :  { %p934_p9 = por %p933_p8, %p932_p7 }
 0x2ea   :  { %p935_p10 = pnand %p934_p9, %p928_p6 }
 0x2ec   :  { %938 = shalt.err (!%p935_p10)
}
 0x2ed   :  { %s939_s19 = scalar_lea.hbm %s1204_s9, 128 }
 0x2ee   :  { %p940_p11 = scmp.ne.s32.totalorder %s1204_s9, %s939_s19  ;;  %p943_p12 = scmp.lt.u32.totalorder %s939_s19, %s1204_s9 }
 0x2f0   :  { %p945_p13 = pnand %p943_p12, %p940_p11 }
 0x2f2   :  { %948 = shalt.err (!%p945_p13)
}
 0x2f3   :  { %505 = dma.vmem_to_hbm [thread:$0]  %s503_s24, 128, %s1204_s9, [#allocation5]   ;;  %vm494_vm1 = vcmask 57344  }
 0x2f4   :  { %s770_s20 = spop %769  ;;  %s994_s21 = smov [#allocation15]  }
 0x2f5   :  { %v492_v5 = vstv %s770_s20  ;;  %s522_s1 = sshll.u32 %s994_s21, 4  ;;  %s523_s1 = int_to_ptr.vmem [resolvable:$true] %s522_s1 }
 0x2f6   :  { %s949_s3 = scalar_lea.vmem %s523_s1, 16  ;;  %s953_s23 = scalar_lea.vmem %s523_s1, 32 }
 0x2f7   :  { %p950_p0 = scmp.ne.s32.totalorder %s523_s1, %s949_s3  ;;  %p954_p1 = scmp.lt.s32.totalorder %s523_s1, %s523_s1 }
 0x2f8   :  { %p955_p2 = scmp.lt.s32.totalorder %s953_s23, %s949_s3 }
 0x2fa   :  { %p956_p3 = por %p955_p2, %p954_p1 }
 0x2fc   :  { %p957_p4 = pnand %p956_p3, %p950_p0 }
 0x3af   :  { %v488_v6 = vpop.f32.mrb[2].mxu1 }
 0x3b0   :  { %v493_v7 = vmul.f32 %v492_v5, %v488_v6  ;;  %v688_v8 = vpop.f32.mrb[3].mxu1 }
 0x3b2   :  { %495 = vst.msk [vmem:[#allocation15] sm:$0x1] %vm494_vm1, %v493_v7 }
 0x3b3   :  { %960 = shalt.err (!%p957_p4)
}
 0x3b4   :  { %s961_s7 = scalar_lea.hbm %s1206_s11, 16 }
 0x3b5   :  { %p962_p5 = scmp.ne.s32.totalorder %s1206_s11, %s961_s7  ;;  %p965_p6 = scmp.lt.u32.totalorder %s961_s7, %s1206_s11 }
 0x3b7   :  { %p967_p7 = pnand %p965_p6, %p962_p5 }
 0x3b9   :  { %970 = shalt.err (!%p967_p7)
}
 0x3ba   :  { %525 = dma.vmem_to_hbm [thread:$0]  %s523_s1, 16, %s1206_s11, [#allocation14]  }
 0x3bb   :  { %977 = dma.done.wait [#allocation5], 128  }
 0x3bc   :  { %978 = vsyncadd [#allocation5], 4294967168 }
 0x3bd   :  { %979 = dma.done.wait [#allocation14], 144  }
 0x3be   :  { %980 = vsyncadd [#allocation14], 4294967152 }
 0x3bf   :  { %535 = vsyncpa [#allocation4], 1 }
 0x3c0   :  { %536 = vsyncpa [#allocation7], 1 }
 0x3c1   :  { %537 = vsyncpa [#allocation10], 1 }
 0x3c2   :  { %538 = vsyncpa [#allocation5], 1 }
 0x3c3   :  { %539 = vsyncpa [#allocation14], 1 }

</bundles_post_ra>
